<compile_context>
chip_gen: v5e
topology: v5e:2x2
jax: 0.10.0
libtpu: 0.0.40
codegen_flags: <defaults>
</compile_context>

<pallas_src>
import functools

import jax
import jax.numpy as jnp
from jax import lax
from jax.experimental import pallas as pl
from jax.experimental.pallas import tpu as pltpu


def _round_up(n, m):
    return ((n + m - 1) // m) * m


# Attention-style dimension numbers: contract the LAST dim of both operands
# (A @ B^T); the big batch tile stays in its natural (rows, feat) layout.
_TRANS_B_DIMS = (((1,), (1,)), ((), ()))


def mlp_kernel(x_ref,
               w12_ref, b12_ref,
               w34_ref, b34_ref,
               w5_ref, b5_ref,
               o_ref):
    # x_ref: (tile_b, 36) input dtype; weights bf16 [out, in]; biases f32 [out, 1].
    xb = x_ref[...].astype(jnp.bfloat16)                            # (T, 36)

    # h1^T = W12 @ x^T : (32, 36) x (T, 36)^T -> (32, T)  (batch on lanes)
    h = lax.dot_general(w12_ref[...], xb, _TRANS_B_DIMS,
                        preferred_element_type=jnp.float32)
    h = jnp.maximum(h + b12_ref[...], 0.0).astype(jnp.bfloat16)     # (32, T)

    # h2^T = W34 @ h1^T : (8, 32) x (32, T) -> (8, T)
    h = jnp.dot(w34_ref[...], h, preferred_element_type=jnp.float32)
    h = jnp.maximum(h + b34_ref[...], 0.0).astype(jnp.bfloat16)     # (8, T)

    # out^T = W5 @ h2^T : (8, 8) x (8, T) -> (8, T)   (rows 4..7 are zero pad)
    out = jnp.dot(w5_ref[...], h, preferred_element_type=jnp.float32)
    o_ref[...] = (out + b5_ref[...]).astype(o_ref.dtype)


def fold_params(params):
    """Fold the two affine pairs (exact in f32).  Call ONCE per model.

    Input params are in PyTorch layout: W [out, in], b [out].
    Returns (w12, b12, w34, b34, w5, b5): weights bf16 [out, in], biases f32
    [out, 1]; the last layer is zero-padded from 4 to 8 output rows.
    """
    (w1, b1), (w2, b2), (w3, b3), (w4, b4), (w5, b5) = params
    w12 = w2 @ w1                     # (32, 36)
    b12 = w2 @ b1 + b2                # (32,)
    w34 = w4 @ w3                     # (8, 32)
    b34 = w4 @ b3 + b4                # (8,)
    # Pad the last layer 4 -> 8 rows (sublane granule); extra rows are zeros.
    w5p = jnp.zeros((8, w5.shape[1]), w5.dtype).at[:4].set(w5)
    b5p = jnp.zeros((8,), b5.dtype).at[:4].set(b5)

    def prep(w, b):
        return w.astype(jnp.bfloat16), b.astype(jnp.float32).reshape(-1, 1)

    return (*prep(w12, b12), *prep(w34, b34), *prep(w5p, b5p))


@functools.partial(jax.jit, static_argnames=("tile_b",))
def simple_net_forward(x, folded, tile_b=8192):
    """x: [B, 36] float32 -> [B, 4] float32 (eval-mode simpleNet forward).

    `folded` is the 6-tuple from fold_params().  tile_b is the batch tile
    (rows per grid step); default 8192 ~= 1.25 MB of HBM traffic per step.
    """
    B, feat = x.shape
    assert feat == 36, x.shape
    w12, b12, w34, b34, w5, b5 = folded

    # Tile: multiple of 128 (lane-dense output blocks), clamped to the batch.
    tile = min(tile_b, _round_up(B, 128))
    # v7x has 2 TensorCores: keep >= 2 grid steps for non-trivial batches so
    # the "parallel" grid axis can shard across both (no-op on v5e/v6e).
    if B > 1024:
        tile = min(tile, _round_up(pl.cdiv(B, 2), 128))
    tile = max(tile, 128)

    b_pad = _round_up(B, tile)      # output is over-allocated; x is NOT padded
    grid = (b_pad // tile,)

    # x streams per grid step; weights/biases stay VMEM-resident (constant
    # index_map => no re-DMA across the grid).
    x_spec = pl.BlockSpec((tile, feat), lambda i: (i, 0))
    w_specs = [pl.BlockSpec(p.shape, lambda i: (0, 0))
               for p in (w12, b12, w34, b34, w5, b5)]

    out_t = pl.pallas_call(
        mlp_kernel,
        out_shape=jax.ShapeDtypeStruct((8, b_pad), jnp.float32),
        grid=grid,
        in_specs=[x_spec] + w_specs,
        out_specs=pl.BlockSpec((8, tile), lambda i: (0, i)),
        compiler_params=pltpu.CompilerParams(
            dimension_semantics=("parallel",),
            vmem_limit_bytes=32 * 1024 * 1024),
    )(x, w12, b12, w34, b34, w5, b5)

    # (8, b_pad) lane-dense kernel output -> [B, 4]; tiny slice+transpose that
    # fuses under jit (rows 4..7 and columns >= B are padding).
    return out_t[:4, :B].T


def init_params(key):
    """Deterministic params in PyTorch nn.Linear layout: W [out, in], b [out]."""
    sizes = [(36, 64), (64, 32), (32, 16), (16, 8), (8, 4)]
    params = []
    for fan_in, fan_out in sizes:
        kw, kb, key = jax.random.split(key, 3)
        bound = 1.0 / jnp.sqrt(fan_in)
        w = jax.random.uniform(kw, (fan_out, fan_in), jnp.float32, -bound, bound)
        b = jax.random.uniform(kb, (fan_out,), jnp.float32, -bound, bound)
        params.append((w, b))
    return params


def reference_forward(x, params):
    """Pure-f32 reference of the original 5-layer eval-mode forward."""
    h = x
    for i, (w, b) in enumerate(params):
        h = h @ w.T + b
        if i in (1, 3):   # ReLU after the 2nd and 4th Linear (per nn.Sequential)
            h = jnp.maximum(h, 0.0)
    return h


if __name__ == "__main__":
    key = jax.random.PRNGKey(0)
    kx, kp = jax.random.split(key)
    params = init_params(kp)
    folded = fold_params(params)          # hoisted out of the per-call path

    # Small batch (single grid step).
    B = 8
    x = jax.random.normal(kx, (B, 36), dtype=jnp.float32)
    out = jax.block_until_ready(simple_net_forward(x, folded))
    ref = reference_forward(x, params)
    assert out.shape == (B, 4), out.shape
    # Loose tolerance: bf16 weights + bf16 intermediate activations (f32 acc).
    assert jnp.allclose(out, ref, atol=2e-2, rtol=2e-2), "mismatch vs reference (B=8)"

    # Ragged batch exercising multiple grid steps + a ragged last input block.
    B2 = 300
    x2 = jax.random.normal(jax.random.PRNGKey(1), (B2, 36), dtype=jnp.float32)
    out2 = jax.block_until_ready(simple_net_forward(x2, folded, tile_b=128))
    ref2 = reference_forward(x2, params)
    assert out2.shape == (B2, 4), out2.shape
    assert jnp.allclose(out2, ref2, atol=2e-2, rtol=2e-2), "mismatch vs reference (B=300)"

    print("KERNEL_OK")
</pallas_src>

<mosaic_0001>
module attributes {stable_mosaic.version = 11 : i64} {
  func.func @mlp_kernel(%arg0: i32, %arg1: memref<128x36xf32, #tpu.memory_space<vmem>>, %arg2: memref<32x36xbf16, #tpu.memory_space<vmem>>, %arg3: memref<32x1xf32, #tpu.memory_space<vmem>>, %arg4: memref<8x32xbf16, #tpu.memory_space<vmem>>, %arg5: memref<8x1xf32, #tpu.memory_space<vmem>>, %arg6: memref<8x8xbf16, #tpu.memory_space<vmem>>, %arg7: memref<8x1xf32, #tpu.memory_space<vmem>>, %arg8: memref<8x128xf32, #tpu.memory_space<vmem>>) attributes {dimension_semantics = [#tpu.dimension_semantics<parallel>], iteration_bounds = array<i64: 1>, scalar_prefetch = 0 : i64, scratch_operands = 0 : i64, tpu.core_type = #tpu.core_type<tc>, window_params = [{transform_indices = @transform_0, window_bounds = array<i64: 128, 36>}, {pipeline_mode = #tpu.pipeline_mode<synchronous>, transform_indices = @transform_1, window_bounds = array<i64: 32, 36>}, {pipeline_mode = #tpu.pipeline_mode<synchronous>, transform_indices = @transform_2, window_bounds = array<i64: 32, 1>}, {pipeline_mode = #tpu.pipeline_mode<synchronous>, transform_indices = @transform_3, window_bounds = array<i64: 8, 32>}, {pipeline_mode = #tpu.pipeline_mode<synchronous>, transform_indices = @transform_4, window_bounds = array<i64: 8, 1>}, {pipeline_mode = #tpu.pipeline_mode<synchronous>, transform_indices = @transform_5, window_bounds = array<i64: 8, 8>}, {pipeline_mode = #tpu.pipeline_mode<synchronous>, transform_indices = @transform_6, window_bounds = array<i64: 8, 1>}, {transform_indices = @transform_7, window_bounds = array<i64: 8, 128>}]} {
    %c0 = arith.constant 0 : index
    %c0_0 = arith.constant 0 : index
    %0 = vector.load %arg1[%c0, %c0_0] : memref<128x36xf32, #tpu.memory_space<vmem>>, vector<128x36xf32>
    %1 = arith.truncf %0 : vector<128x36xf32> to vector<128x36xbf16>
    %c0_1 = arith.constant 0 : index
    %c0_2 = arith.constant 0 : index
    %2 = vector.load %arg2[%c0_1, %c0_2] : memref<32x36xbf16, #tpu.memory_space<vmem>>, vector<32x36xbf16>
    %cst = arith.constant dense<0.000000e+00> : vector<32x128xf32>
    %3 = tpu.matmul %2, %1, %cst {dimension_numbers = #tpu.dot_dimension_numbers<[1], [1], [0], [0], [0, 0, 1, 0], [], []>} : vector<32x36xbf16>, vector<128x36xbf16>, vector<32x128xf32> -> vector<32x128xf32>
    %c0_3 = arith.constant 0 : index
    %c0_4 = arith.constant 0 : index
    %4 = vector.load %arg3[%c0_3, %c0_4] : memref<32x1xf32, #tpu.memory_space<vmem>>, vector<32x1xf32>
    %5 = vector.broadcast %4 : vector<32x1xf32> to vector<32x128xf32>
    %6 = arith.addf %3, %5 : vector<32x128xf32>
    %cst_5 = arith.constant 0.000000e+00 : f32
    %7 = vector.broadcast %cst_5 : f32 to vector<32x128xf32>
    %8 = arith.maximumf %6, %7 : vector<32x128xf32>
    %9 = arith.truncf %8 : vector<32x128xf32> to vector<32x128xbf16>
    %c0_6 = arith.constant 0 : index
    %c0_7 = arith.constant 0 : index
    %10 = vector.load %arg4[%c0_6, %c0_7] : memref<8x32xbf16, #tpu.memory_space<vmem>>, vector<8x32xbf16>
    %cst_8 = arith.constant dense<0.000000e+00> : vector<8x128xf32>
    %11 = tpu.matmul %10, %9, %cst_8 {dimension_numbers = #tpu.dot_dimension_numbers<[1], [0], [0], [1], [0, 0, 1, 1], [], []>} : vector<8x32xbf16>, vector<32x128xbf16>, vector<8x128xf32> -> vector<8x128xf32>
    %c0_9 = arith.constant 0 : index
    %c0_10 = arith.constant 0 : index
    %12 = vector.load %arg5[%c0_9, %c0_10] : memref<8x1xf32, #tpu.memory_space<vmem>>, vector<8x1xf32>
    %13 = vector.broadcast %12 : vector<8x1xf32> to vector<8x128xf32>
    %14 = arith.addf %11, %13 : vector<8x128xf32>
    %cst_11 = arith.constant 0.000000e+00 : f32
    %15 = vector.broadcast %cst_11 : f32 to vector<8x128xf32>
    %16 = arith.maximumf %14, %15 : vector<8x128xf32>
    %17 = arith.truncf %16 : vector<8x128xf32> to vector<8x128xbf16>
    %c0_12 = arith.constant 0 : index
    %c0_13 = arith.constant 0 : index
    %18 = vector.load %arg6[%c0_12, %c0_13] : memref<8x8xbf16, #tpu.memory_space<vmem>>, vector<8x8xbf16>
    %cst_14 = arith.constant dense<0.000000e+00> : vector<8x128xf32>
    %19 = tpu.matmul %18, %17, %cst_14 {dimension_numbers = #tpu.dot_dimension_numbers<[1], [0], [0], [1], [0, 0, 1, 1], [], []>} : vector<8x8xbf16>, vector<8x128xbf16>, vector<8x128xf32> -> vector<8x128xf32>
    %c0_15 = arith.constant 0 : index
    %c0_16 = arith.constant 0 : index
    %20 = vector.load %arg7[%c0_15, %c0_16] : memref<8x1xf32, #tpu.memory_space<vmem>>, vector<8x1xf32>
    %21 = vector.broadcast %20 : vector<8x1xf32> to vector<8x128xf32>
    %22 = arith.addf %19, %21 : vector<8x128xf32>
    %c0_17 = arith.constant 0 : index
    %c0_18 = arith.constant 0 : index
    %23 = vector.load %arg8[%c0_17, %c0_18] : memref<8x128xf32, #tpu.memory_space<vmem>>, vector<8x128xf32>
    tpu.vector_store %arg8[%c0_17, %c0_18], %22 {strides = array<i32>} : memref<8x128xf32, #tpu.memory_space<vmem>>, vector<8x128xf32>,
    return
  }
  func.func @transform_0(%arg0: i32) -> (i32, i32) {
    %c0_i32 = arith.constant 0 : i32
    %c0_i32_0 = arith.constant 0 : i32
    return %arg0, %c0_i32 : i32, i32
  }
  func.func @transform_1(%arg0: i32) -> (i32, i32) {
    %c0_i32 = arith.constant 0 : i32
    %c0_i32_0 = arith.constant 0 : i32
    %c0_i32_1 = arith.constant 0 : i32
    return %c0_i32, %c0_i32_0 : i32, i32
  }
  func.func @transform_2(%arg0: i32) -> (i32, i32) {
    %c0_i32 = arith.constant 0 : i32
    %c0_i32_0 = arith.constant 0 : i32
    %c0_i32_1 = arith.constant 0 : i32
    return %c0_i32, %c0_i32_0 : i32, i32
  }
  func.func @transform_3(%arg0: i32) -> (i32, i32) {
    %c0_i32 = arith.constant 0 : i32
    %c0_i32_0 = arith.constant 0 : i32
    %c0_i32_1 = arith.constant 0 : i32
    return %c0_i32, %c0_i32_0 : i32, i32
  }
  func.func @transform_4(%arg0: i32) -> (i32, i32) {
    %c0_i32 = arith.constant 0 : i32
    %c0_i32_0 = arith.constant 0 : i32
    %c0_i32_1 = arith.constant 0 : i32
    return %c0_i32, %c0_i32_0 : i32, i32
  }
  func.func @transform_5(%arg0: i32) -> (i32, i32) {
    %c0_i32 = arith.constant 0 : i32
    %c0_i32_0 = arith.constant 0 : i32
    %c0_i32_1 = arith.constant 0 : i32
    return %c0_i32, %c0_i32_0 : i32, i32
  }
  func.func @transform_6(%arg0: i32) -> (i32, i32) {
    %c0_i32 = arith.constant 0 : i32
    %c0_i32_0 = arith.constant 0 : i32
    %c0_i32_1 = arith.constant 0 : i32
    return %c0_i32, %c0_i32_0 : i32, i32
  }
  func.func @transform_7(%arg0: i32) -> (i32, i32) {
    %c0_i32 = arith.constant 0 : i32
    %c0_i32_0 = arith.constant 0 : i32
    return %c0_i32, %arg0 : i32, i32
  }
}

</mosaic_0001>

<bundles_post_ra>
// kernel: simple_net_forward.1
= control target key start
LH: loop header
LB: loop body
LE: loop exit
PB: predicated region body
PF: predicated region fallthrough
CT: control target
= control target key end

     0   :  { %vm89_vm0 = vcmask 293888   ;;  %v230_v25 = vmov 0   ;;  %vm152_vm1 = vcmask 261120   ;;  %vm182_vm2 = vcmask 1043456   ;;  %s362_s0 = inlined_call_operand.vmem [shape: f32[8,36], index: 0, kind: input, shape index: {}]   ;;  %s363_s2 = inlined_call_operand.vmem [shape: f32[32,1], index: 2, kind: input, shape index: {}]   ;;  %s364_s1 = inlined_call_operand.vmem [shape: bf16[32,36], index: 1, kind: input, shape index: {}]   ;;  %s365_s4 = inlined_call_operand.vmem [shape: f32[8,1], index: 4, kind: input, shape index: {}]   ;;  %s366_s6 = inlined_call_operand.vmem [shape: f32[8,1], index: 6, kind: input, shape index: {}]   ;;  %s367_s3 = inlined_call_operand.vmem [shape: bf16[8,32], index: 3, kind: input, shape index: {}]   ;;  %s368_s5 = inlined_call_operand.vmem [shape: bf16[8,8], index: 5, kind: input, shape index: {}]   ;;  %s369_s7 = inlined_call_operand.vmem [shape: f32[8,128], index: 7, kind: output, shape index: {}]  }
   0x1   :  { %v41_v0 = vld [vmem:[%s362_s0 + $0x70] sm:$0xff]  ;;  %v42_v1 = vld [vmem:[%s362_s0 + $0x78] sm:$0xff]  ;;  %v39_v3 = vld [vmem:[%s362_s0 + $0x60] sm:$0xff]  ;;  %227 = vset.pattern.permute.xlu0 %v230_v25  ;;  %228 = vset.pattern.permute.xlu1 %v230_v25  ;;  %vm178_vm3 = vcmask 64512  }
   0x2   :  { %v50_v2 = vpack.c.bf16 %v42_v1, %v41_v0  ;;  %v40_v4 = vld [vmem:[%s362_s0 + $0x68] sm:$0xff]  ;;  %v37_v8 = vld [vmem:[%s362_s0 + $0x50] sm:$0xff]  ;;  %v38_v9 = vld [vmem:[%s362_s0 + $0x58] sm:$0xff]  ;;  %229 = vset.pattern.permute.xlu2 %v230_v25 }
   0x3   :  { %v49_v6 = vpack.c.bf16 %v40_v4, %v39_v3  ;;  %v48_v10 = vpack.c.bf16 %v38_v9, %v37_v8  ;;  %v35_v12 = vld [vmem:[%s362_s0 + $0x40] sm:$0xff]  ;;  %v36_v13 = vld [vmem:[%s362_s0 + $0x48] sm:$0xff]  ;;  %v33_v16 = vld [vmem:[%s362_s0 + $0x30] sm:$0xff] }
   0x4   :  { %v118_v5 = vsel %vm89_vm0, %v50_v2, 0  ;;  %v47_v14 = vpack.c.bf16 %v36_v13, %v35_v12  ;;  %v34_v17 = vld [vmem:[%s362_s0 + $0x38] sm:$0xff]  ;;  %v31_v20 = vld [vmem:[%s362_s0 + $0x20] sm:$0xff]  ;;  %v32_v21 = vld [vmem:[%s362_s0 + $0x28] sm:$0xff] }
   0x5   :  { %218 = vmatpush.bf16.xpose.msra.mxu3 %v118_v5  ;;  %120 = vmatpush.bf16.xpose.msra.mxu0 %v118_v5  ;;  %v115_v7 = vsel %vm89_vm0, %v49_v6, 0  ;;  %v112_v11 = vsel %vm89_vm0, %v48_v10, 0  ;;  %v46_v18 = vpack.c.bf16 %v34_v17, %v33_v16  ;;  %v57_v22 = vld [vmem:[%s363_s2 + $0x10] sm:$0xff]  ;;  %v55_v23 = vld [vmem:[%s363_s2] sm:$0xff]  ;;  %v45_v24 = vpack.c.bf16 %v32_v21, %v31_v20  ;;  %v30_v28 = vld [vmem:[%s362_s0 + $0x18] sm:$0xff] }
   0x6   :  { %v109_v15 = vsel %vm89_vm0, %v47_v14, 0  ;;  %71 = vperm.xlu0 %227, %v57_v22   ;;  %61 = vperm.xlu1 %228, %v55_v23   ;;  %v29_v27 = vld [vmem:[%s362_s0 + $0x10] sm:$0xff]  ;;  %v58_v29 = vld [vmem:[%s363_s2 + $0x18] sm:$0xff]  ;;  %v56_v30 = vld [vmem:[%s363_s2 + $0x8] sm:$0xff] }
   0x7   :  { %v106_v19 = vsel %vm89_vm0, %v46_v18, 0  ;;  %v103_v26 = vsel %vm89_vm0, %v45_v24, 0  ;;  %v44_v31 = vpack.c.bf16 %v30_v28, %v29_v27  ;;  %v27_v33 = vld [vmem:[%s362_s0] sm:$0xff]  ;;  %v28_v34 = vld [vmem:[%s362_s0 + $0x8] sm:$0xff] }
   0x8   :  { %v43_v35 = vpack.c.bf16 %v28_v34, %v27_v33  ;;  %v217_v37 = vld [vmem:[%s364_s1 + $0x8] sm:$0xff]  ;;  %v216_v38 = vld [vmem:[%s364_s1] sm:$0xff] }
   0x9   :  { %v100_v32 = vsel %vm89_vm0, %v44_v31, 0  ;;  %v146_v39 = vld [vmem:[%s365_s4] sm:$0xff] }
   0xa   :  { %v97_v36 = vsel %vm89_vm0, %v43_v35, 0  ;;  %149 = vperm.xlu2 %229, %v146_v39   ;;  %v172_v42 = vld [vmem:[%s366_s6] sm:$0xff] }
   0xb   :  { %v145_v59 = vld [vmem:[%s367_s3] sm:$0xf] }
   0xc   :  { %v171_v3 = vld [vmem:[%s368_s5] sm:$0xf] }
   0xd   :  { %219 = vmatpush.bf16.xpose.msra.mxu3 %v115_v7  ;;  %121 = vmatpush.bf16.xpose.msra.mxu0 %v115_v7 }
   0xe   :  { %76 = vperm.xlu0 %227, %v58_v29   ;;  %66 = vperm.xlu1 %228, %v56_v30  }
  0x12   :  { %175 = vperm.xlu2 %229, %v172_v42  }
  0x15   :  { %220 = vmatpush.bf16.xpose.msra.mxu3 %v112_v11  ;;  %122 = vmatpush.bf16.xpose.msra.mxu0 %v112_v11 }
  0x1d   :  { %221 = vmatpush.bf16.xpose.msra.mxu3 %v109_v15  ;;  %123 = vmatpush.bf16.xpose.msra.mxu0 %v109_v15 }
  0x25   :  { %222 = vmatpush.bf16.xpose.msra.mxu3 %v106_v19  ;;  %124 = vmatpush.bf16.xpose.msra.mxu0 %v106_v19 }
  0x2d   :  { %223 = vmatpush.bf16.xpose.msra.mxu3 %v103_v26  ;;  %125 = vmatpush.bf16.xpose.msra.mxu0 %v103_v26 }
  0x35   :  { %224 = vmatpush.bf16.xpose.msra.mxu3 %v100_v32  ;;  %126 = vmatpush.bf16.xpose.msra.mxu0 %v100_v32 }
  0x3d   :  { %225 = vmatpush.bf16.xpose.msra.mxu3 %v97_v36  ;;  %127 = vmatpush.bf16.xpose.msra.mxu0 %v97_v36 }
  0x44   :  { %213 = vmatmul.msk.bf16.vlgmr.msra.gmra.mxu3 %vm89_vm0, %v217_v37  ;;  %212 = vmatmul.msk.bf16.vlgmr.msra.gmra.mxu0 %vm89_vm0, %v216_v38 }
  0x64   :  { %v150_v60 = vpop.permute.xlu2 %149 }
  0x6c   :  { %v176_v4 = vpop.permute.xlu2 %175 }
  0x78   :  { %v62_v40 = vpop.permute.xlu1 %61  ;;  %v72_v43 = vpop.permute.xlu0 %71 }
  0x80   :  { %v67_v45 = vpop.permute.xlu1 %66  ;;  %v77_v48 = vpop.permute.xlu0 %76 }
  0xc1   :  { %v129_v41 = vpop.f32.mrf.mxu0 }
  0xc2   :  { %v130_v50 = vadd.f32 %v129_v41, %v62_v40 }
  0xc4   :  { %v139_v55 = vmax.f32 %v130_v50, 0.0 }
  0xc7   :  { %v134_v44 = vpop.f32.mrf.mxu3 }
  0xc8   :  { %v135_v47 = vadd.f32 %v134_v44, %v72_v43 }
  0xc9   :  { %v131_v46 = vpop.f32.mrf.mxu0 }
  0xca   :  { %v132_v51 = vadd.f32 %v131_v46, %v67_v45  ;;  %v141_v53 = vmax.f32 %v135_v47, 0.0 }
  0xcc   :  { %v140_v56 = vmax.f32 %v132_v51, 0.0 }
  0xce   :  { %v143_v58 = vpack.c.bf16 %v140_v56, %v139_v55 }
  0xcf   :  { %v136_v49 = vpop.f32.mrf.mxu3 }
  0xd0   :  { %v137_v52 = vadd.f32 %v136_v49, %v77_v48 }
  0xd2   :  { %v142_v54 = vmax.f32 %v137_v52, 0.0 }
  0xd4   :  { %v144_v57 = vpack.c.bf16 %v142_v54, %v141_v53 }
  0xd6   :  { %162 = vmatpush.bf16.msra.mxu1 %v144_v57 }
  0xda   :  { %163 = vmatpush.bf16.msra.mxu1 %v143_v58 }
  0xdd   :  { %214 = vmatmul.msk.bf16.vlgmr.msra.gmra.mxu1 %vm152_vm1, %v145_v59 }
 0x15a   :  { %v165_v61 = vpop.f32.mrf.mxu1 }
 0x15b   :  { %v166_v62 = vadd.f32 %v165_v61, %v150_v60 }
 0x15d   :  { %v169_v63 = vmax.f32 %v166_v62, 0.0 }
 0x15f   :  { %v170_v0 = vpack.c.bf16 %v169_v63, %v169_v63 }
 0x161   :  { %v184_v1 = vsel %vm182_vm2, %v170_v0, 0 }
 0x162   :  { %v167_v2 = vpop.f32.mrf.mxu1  ;;  %193 = vmatpush.bf16.msra.mxu2 %v184_v1 }
 0x165   :  { %215 = vmatmul.msk.bf16.vlgmr.msra.gmra.mxu2 %vm178_vm3, %v171_v3 }
 0x1e8   :  { %v195_v5 = vpop.f32.mrf.mxu2 }
 0x1e9   :  { %v196_v6 = vadd.f32 %v195_v5, %v176_v4 }
 0x1eb   :  { %199 = vst [vmem:[%s369_s7] sm:$0xff] %v196_v6 }
 0x1f0   :  { %v197_v7 = vpop.f32.mrf.mxu2 }

</bundles_post_ra>
